<compile_context>
chip_gen: v6e
topology: v6e:2x2x1
jax: 0.10.0
libtpu: 0.0.40
codegen_flags: <defaults>
</compile_context>

<pallas_src>
import jax
import jax.numpy as jnp
from jax.experimental import pallas as pl
from jax.experimental.pallas import tpu as pltpu


def _round_up(x, m):
    return ((x + m - 1) // m) * m


def _cdiv(a, b):
    return (a + b - 1) // b


def _default_elem_dtype():
    """bf16 elementwise on chips with bf16 VPU/EUP (v6e/v7x), f32 otherwise."""
    try:
        kind = jax.devices()[0].device_kind.lower()
    except Exception:  # no device info -> safe default
        return jnp.float32
    for old in ("v2", "v3", "v4", "v5"):
        if old in kind:
            return jnp.float32
    return jnp.bfloat16


def _silu(x):
    # silu(x) = x * sigmoid(x) = 0.5 * x * (1 + tanh(0.5 * x))
    # Single EUP transcendental; works in bf16 or f32 depending on x.dtype.
    return 0.5 * x * (1.0 + jnp.tanh(0.5 * x))


def _make_kernel(u_dim, out_dim, elem_dtype, vpu_tail):
    """Build the fused 5-layer MLP kernel for static (u_dim, out_dim)."""

    def kernel(u_ref, t_ref,
               w1_ref, b1_ref,
               w2_ref, b2_ref,
               w3_ref, b3_ref,
               w4_ref, b4_ref,
               w5_ref, b5_ref,
               o_ref):
        u_e = u_ref[...].astype(elem_dtype)          # (tb, u_dim)
        t_e = t_ref[...].astype(elem_dtype)          # (tb, 1)

        # ---- Layer 1 on the VPU ------------------------------------------
        # cat([u, t]) @ W1 + b1 with K = u_dim + 1 tiny: MXU pushes cost ~M/8
        # regardless of K, so broadcast multiply-adds are much cheaper here.
        h = b1_ref[...]                              # (1, H) -> broadcasts
        for k in range(u_dim):
            h = h + u_e[:, k:k + 1] * w1_ref[k:k + 1, :]
        h = h + t_e * w1_ref[u_dim:u_dim + 1, :]
        h = _silu(h)

        # ---- Hidden layers 2-4 on the MXU --------------------------------
        # bf16 operands, f32 accumulation; bias+SiLU in elem_dtype.
        for w_ref, b_ref in ((w2_ref, b2_ref), (w3_ref, b3_ref), (w4_ref, b4_ref)):
            acc = jnp.dot(h.astype(jnp.bfloat16), w_ref[...],
                          preferred_element_type=jnp.float32)
            h = _silu(acc.astype(elem_dtype) + b_ref[...])

        # ---- Output layer ------------------------------------------------
        if vpu_tail:
            # N = out_dim is tiny: per-column VPU multiply + XLU lane reduce
            # (f32 product/accumulate to match MXU-accumulation numerics).
            hf = h.astype(jnp.float32)
            cols = [jnp.sum(hf * w5_ref[j:j + 1, :], axis=-1, keepdims=True)
                    for j in range(out_dim)]
            out = jnp.concatenate(cols, axis=-1) + b5_ref[...]
        else:
            out = jnp.dot(h.astype(jnp.bfloat16), w5_ref[...],
                          preferred_element_type=jnp.float32) + b5_ref[...]
        o_ref[...] = out.astype(o_ref.dtype)

    return kernel


def mlp_pallas(u, t, params, *, tile_b=2048, elem_dtype=None):
    """u: (B, u_dim) f32, t: (B,) f32, params: list of 5 (W, b) pairs (f32)."""
    B, u_dim = u.shape
    in_dim, hidden = params[0][0].shape
    index_dim = in_dim - u_dim
    assert index_dim == 1, "kernel fuses the concat assuming index_dim == 1"
    out_dim = params[-1][0].shape[1]

    if elem_dtype is None:
        elem_dtype = _default_elem_dtype()
    vpu_tail = out_dim <= 8   # tiny N -> VPU/XLU path; otherwise MXU matmul

    # ---- adaptive batch tiling -------------------------------------------
    #  * cap at tile_b (amortizes per-grid-step overhead),
    #  * clamp for tiny batches,
    #  * force >=2 grid steps when possible so v7x's 2 TensorCores both work.
    max_tile = max(8, min(tile_b, _round_up(B, 8)))
    n_steps = _cdiv(B, max_tile)
    if n_steps == 1 and B > 8:
        n_steps = 2
    tile_b = _round_up(_cdiv(B, n_steps), 8)
    B_pad = n_steps * tile_b

    u = u.astype(jnp.float32)
    t2 = t.reshape(-1, 1).astype(jnp.float32)
    if B_pad != B:
        u = jnp.pad(u, ((0, B_pad - B), (0, 0)))
        t2 = jnp.pad(t2, ((0, B_pad - B), (0, 0)))

    # ---- parameter packing -------------------------------------------------
    (w1, b1), (w2, b2), (w3, b3), (w4, b4), (w5, b5) = params
    flat = [
        w1.astype(elem_dtype),                        # (in_dim, H)  VPU layer 1
        b1.reshape(1, -1).astype(elem_dtype),         # (1, H)
        w2.astype(jnp.bfloat16), b2.reshape(1, -1).astype(elem_dtype),
        w3.astype(jnp.bfloat16), b3.reshape(1, -1).astype(elem_dtype),
        w4.astype(jnp.bfloat16), b4.reshape(1, -1).astype(elem_dtype),
    ]
    if vpu_tail:
        flat.append(w5.T.astype(jnp.float32))         # (out_dim, H) for lane-reduce
    else:
        flat.append(w5.astype(jnp.bfloat16))          # (H, out_dim) for MXU
    flat.append(b5.reshape(1, -1).astype(jnp.float32))  # (1, out_dim)

    def _full(arr):
        # whole (small) parameter array resident in VMEM every grid step
        return pl.BlockSpec(arr.shape, lambda i: (0, 0))

    in_specs = [pl.BlockSpec((tile_b, u_dim), lambda i: (i, 0)),
                pl.BlockSpec((tile_b, 1), lambda i: (i, 0))]
    in_specs += [_full(p) for p in flat]

    kernel = _make_kernel(u_dim, out_dim, elem_dtype, vpu_tail)

    out = pl.pallas_call(
        kernel,
        out_shape=jax.ShapeDtypeStruct((B_pad, out_dim), jnp.float32),
        grid_spec=pltpu.PrefetchScalarGridSpec(
            num_scalar_prefetch=0,
            grid=(n_steps,),
            in_specs=in_specs,
            out_specs=pl.BlockSpec((tile_b, out_dim), lambda i: (i, 0)),
        ),
        compiler_params=pltpu.CompilerParams(
            dimension_semantics=("parallel",),
            vmem_limit_bytes=32 * 1024 * 1024,
        ),
    )(u, t2, *flat)

    return out[:B]


def init_params(key, in_dim, hidden_dim, out_dim):
    """torch.nn.Linear default init: U[-1/sqrt(fan_in), 1/sqrt(fan_in)]."""
    dims = [in_dim, hidden_dim, hidden_dim, hidden_dim, hidden_dim, out_dim]
    params = []
    for li in range(5):
        fan_in, fan_out = dims[li], dims[li + 1]
        key, kw, kb = jax.random.split(key, 3)
        bound = 1.0 / jnp.sqrt(fan_in)
        w = jax.random.uniform(kw, (fan_in, fan_out), jnp.float32, -bound, bound)
        b = jax.random.uniform(kb, (fan_out,), jnp.float32, -bound, bound)
        params.append((w, b))
    return params


def mlp_forward(u, t, params):
    # forward: h = cat([u, t.reshape(-1,1)], dim=1); out = main(h)
    # (the concat is fused into the first-layer broadcast-MAC inside the kernel)
    return mlp_pallas(u, t, params)


def mlp_reference(u, t, params):
    h = jnp.concatenate([u, t.reshape(-1, 1)], axis=1)
    for i, (w, b) in enumerate(params):
        h = h @ w + b
        if i < len(params) - 1:
            h = jax.nn.silu(h)
    return h


if __name__ == "__main__":
    # config.sde == 'cld'  ->  x_input and v_input both True
    input_dim = 2
    index_dim = 1
    hidden_dim = 128
    in_dim = input_dim * 2 + index_dim   # = 5
    out_dim = input_dim                  # = 2

    key = jax.random.PRNGKey(0)
    k_u, k_t, k_p = jax.random.split(key, 3)
    params = init_params(k_p, in_dim, hidden_dim, out_dim)

    # --- small deterministic example (batch=2) with the default path -------
    batch = 2
    u = jax.random.normal(k_u, (batch, input_dim * 2), jnp.float32)  # (B, 4): [x, v]
    t = jax.random.uniform(k_t, (batch,), jnp.float32)               # (B,)

    out = jax.block_until_ready(mlp_forward(u, t, params))
    ref = mlp_reference(u, t, params)
    assert out.shape == (batch, out_dim)
    # bf16 MXU operands (+ possibly bf16 elementwise) -> relaxed tolerance
    assert jnp.allclose(out, ref, atol=6e-2, rtol=6e-2), "mismatch vs reference (batch=2)"

    # --- ragged batch, multi-step grid, both elementwise dtypes ------------
    k_u2, k_t2 = jax.random.split(k_u)
    batch2 = 50
    u2 = jax.random.normal(k_u2, (batch2, input_dim * 2), jnp.float32)
    t2 = jax.random.uniform(k_t2, (batch2,), jnp.float32)
    ref2 = mlp_reference(u2, t2, params)

    out2_f32 = jax.block_until_ready(
        mlp_pallas(u2, t2, params, tile_b=16, elem_dtype=jnp.float32))
    assert out2_f32.shape == (batch2, out_dim)
    assert jnp.allclose(out2_f32, ref2, atol=3e-2, rtol=3e-2), \
        "mismatch vs reference (batch=50, f32 elementwise)"

    out2_bf16 = jax.block_until_ready(
        mlp_pallas(u2, t2, params, tile_b=16, elem_dtype=jnp.bfloat16))
    assert out2_bf16.shape == (batch2, out_dim)
    assert jnp.allclose(out2_bf16, ref2, atol=6e-2, rtol=6e-2), \
        "mismatch vs reference (batch=50, bf16 elementwise)"

    print("KERNEL_OK")
</pallas_src>

<mosaic_0001>
module attributes {stable_mosaic.version = 11 : i64} {
  func.func @kernel(%arg0: i32, %arg1: memref<8x4xf32, #tpu.memory_space<vmem>>, %arg2: memref<8x1xf32, #tpu.memory_space<vmem>>, %arg3: memref<5x128xbf16, #tpu.memory_space<vmem>>, %arg4: memref<1x128xbf16, #tpu.memory_space<vmem>>, %arg5: memref<128x128xbf16, #tpu.memory_space<vmem>>, %arg6: memref<1x128xbf16, #tpu.memory_space<vmem>>, %arg7: memref<128x128xbf16, #tpu.memory_space<vmem>>, %arg8: memref<1x128xbf16, #tpu.memory_space<vmem>>, %arg9: memref<128x128xbf16, #tpu.memory_space<vmem>>, %arg10: memref<1x128xbf16, #tpu.memory_space<vmem>>, %arg11: memref<2x128xf32, #tpu.memory_space<vmem>>, %arg12: memref<1x2xf32, #tpu.memory_space<vmem>>, %arg13: memref<8x2xf32, #tpu.memory_space<vmem>>) attributes {dimension_semantics = [#tpu.dimension_semantics<parallel>], iteration_bounds = array<i64: 1>, scalar_prefetch = 0 : i64, scratch_operands = 0 : i64, tpu.core_type = #tpu.core_type<tc>, window_params = [{transform_indices = @transform_0, window_bounds = array<i64: 8, 4>}, {transform_indices = @transform_1, window_bounds = array<i64: 8, 1>}, {pipeline_mode = #tpu.pipeline_mode<synchronous>, transform_indices = @transform_2, window_bounds = array<i64: 5, 128>}, {pipeline_mode = #tpu.pipeline_mode<synchronous>, transform_indices = @transform_3, window_bounds = array<i64: 1, 128>}, {pipeline_mode = #tpu.pipeline_mode<synchronous>, transform_indices = @transform_4, window_bounds = array<i64: 128, 128>}, {pipeline_mode = #tpu.pipeline_mode<synchronous>, transform_indices = @transform_5, window_bounds = array<i64: 1, 128>}, {pipeline_mode = #tpu.pipeline_mode<synchronous>, transform_indices = @transform_6, window_bounds = array<i64: 128, 128>}, {pipeline_mode = #tpu.pipeline_mode<synchronous>, transform_indices = @transform_7, window_bounds = array<i64: 1, 128>}, {pipeline_mode = #tpu.pipeline_mode<synchronous>, transform_indices = @transform_8, window_bounds = array<i64: 128, 128>}, {pipeline_mode = #tpu.pipeline_mode<synchronous>, transform_indices = @transform_9, window_bounds = array<i64: 1, 128>}, {pipeline_mode = #tpu.pipeline_mode<synchronous>, transform_indices = @transform_10, window_bounds = array<i64: 2, 128>}, {pipeline_mode = #tpu.pipeline_mode<synchronous>, transform_indices = @transform_11, window_bounds = array<i64: 1, 2>}, {transform_indices = @transform_12, window_bounds = array<i64: 8, 2>}]} {
    %c0 = arith.constant 0 : index
    %c0_0 = arith.constant 0 : index
    %0 = vector.load %arg1[%c0, %c0_0] : memref<8x4xf32, #tpu.memory_space<vmem>>, vector<8x4xf32>
    %1 = arith.truncf %0 : vector<8x4xf32> to vector<8x4xbf16>
    %c0_1 = arith.constant 0 : index
    %c0_2 = arith.constant 0 : index
    %2 = vector.load %arg2[%c0_1, %c0_2] : memref<8x1xf32, #tpu.memory_space<vmem>>, vector<8x1xf32>
    %3 = arith.truncf %2 : vector<8x1xf32> to vector<8x1xbf16>
    %c0_3 = arith.constant 0 : index
    %c0_4 = arith.constant 0 : index
    %4 = vector.load %arg4[%c0_3, %c0_4] : memref<1x128xbf16, #tpu.memory_space<vmem>>, vector<1x128xbf16>
    %5 = vector.extract_strided_slice %1 {offsets = [0, 0], sizes = [8, 1], strides = [1, 1]} : vector<8x4xbf16> to vector<8x1xbf16>
    %c0_5 = arith.constant 0 : index
    %c0_6 = arith.constant 0 : index
    %6 = vector.load %arg3[%c0_5, %c0_6] : memref<5x128xbf16, #tpu.memory_space<vmem>>, vector<1x128xbf16>
    %7 = vector.broadcast %5 : vector<8x1xbf16> to vector<8x128xbf16>
    %8 = vector.broadcast %6 : vector<1x128xbf16> to vector<8x128xbf16>
    %9 = arith.mulf %7, %8 : vector<8x128xbf16>
    %10 = vector.broadcast %4 : vector<1x128xbf16> to vector<8x128xbf16>
    %11 = arith.addf %10, %9 : vector<8x128xbf16>
    %12 = vector.extract_strided_slice %1 {offsets = [0, 1], sizes = [8, 1], strides = [1, 1]} : vector<8x4xbf16> to vector<8x1xbf16>
    %c1 = arith.constant 1 : index
    %c0_7 = arith.constant 0 : index
    %13 = vector.load %arg3[%c1, %c0_7] : memref<5x128xbf16, #tpu.memory_space<vmem>>, vector<1x128xbf16>
    %14 = vector.broadcast %12 : vector<8x1xbf16> to vector<8x128xbf16>
    %15 = vector.broadcast %13 : vector<1x128xbf16> to vector<8x128xbf16>
    %16 = arith.mulf %14, %15 : vector<8x128xbf16>
    %17 = arith.addf %11, %16 : vector<8x128xbf16>
    %18 = vector.extract_strided_slice %1 {offsets = [0, 2], sizes = [8, 1], strides = [1, 1]} : vector<8x4xbf16> to vector<8x1xbf16>
    %c2 = arith.constant 2 : index
    %c0_8 = arith.constant 0 : index
    %19 = vector.load %arg3[%c2, %c0_8] : memref<5x128xbf16, #tpu.memory_space<vmem>>, vector<1x128xbf16>
    %20 = vector.broadcast %18 : vector<8x1xbf16> to vector<8x128xbf16>
    %21 = vector.broadcast %19 : vector<1x128xbf16> to vector<8x128xbf16>
    %22 = arith.mulf %20, %21 : vector<8x128xbf16>
    %23 = arith.addf %17, %22 : vector<8x128xbf16>
    %24 = vector.extract_strided_slice %1 {offsets = [0, 3], sizes = [8, 1], strides = [1, 1]} : vector<8x4xbf16> to vector<8x1xbf16>
    %c3 = arith.constant 3 : index
    %c0_9 = arith.constant 0 : index
    %25 = vector.load %arg3[%c3, %c0_9] : memref<5x128xbf16, #tpu.memory_space<vmem>>, vector<1x128xbf16>
    %26 = vector.broadcast %24 : vector<8x1xbf16> to vector<8x128xbf16>
    %27 = vector.broadcast %25 : vector<1x128xbf16> to vector<8x128xbf16>
    %28 = arith.mulf %26, %27 : vector<8x128xbf16>
    %29 = arith.addf %23, %28 : vector<8x128xbf16>
    %c4 = arith.constant 4 : index
    %c0_10 = arith.constant 0 : index
    %30 = vector.load %arg3[%c4, %c0_10] : memref<5x128xbf16, #tpu.memory_space<vmem>>, vector<1x128xbf16>
    %31 = vector.broadcast %3 : vector<8x1xbf16> to vector<8x128xbf16>
    %32 = vector.broadcast %30 : vector<1x128xbf16> to vector<8x128xbf16>
    %33 = arith.mulf %31, %32 : vector<8x128xbf16>
    %34 = arith.addf %29, %33 : vector<8x128xbf16>
    %cst = arith.constant 5.000000e-01 : bf16
    %35 = vector.broadcast %cst : bf16 to vector<8x128xbf16>
    %36 = arith.mulf %35, %34 : vector<8x128xbf16>
    %cst_11 = arith.constant 5.000000e-01 : bf16
    %37 = vector.broadcast %cst_11 : bf16 to vector<8x128xbf16>
    %38 = arith.mulf %37, %34 : vector<8x128xbf16>
    %39 = math.tanh %38 : vector<8x128xbf16>
    %cst_12 = arith.constant 1.000000e+00 : bf16
    %40 = vector.broadcast %cst_12 : bf16 to vector<8x128xbf16>
    %41 = arith.addf %40, %39 : vector<8x128xbf16>
    %42 = arith.mulf %36, %41 : vector<8x128xbf16>
    %c0_13 = arith.constant 0 : index
    %c0_14 = arith.constant 0 : index
    %43 = vector.load %arg5[%c0_13, %c0_14] : memref<128x128xbf16, #tpu.memory_space<vmem>>, vector<128x128xbf16>
    %cst_15 = arith.constant dense<0.000000e+00> : vector<8x128xf32>
    %44 = tpu.matmul %42, %43, %cst_15 {dimension_numbers = #tpu.dot_dimension_numbers<[1], [0], [0], [1], [0, 0, 1, 1], [], []>} : vector<8x128xbf16>, vector<128x128xbf16>, vector<8x128xf32> -> vector<8x128xf32>
    %45 = arith.truncf %44 : vector<8x128xf32> to vector<8x128xbf16>
    %c0_16 = arith.constant 0 : index
    %c0_17 = arith.constant 0 : index
    %46 = vector.load %arg6[%c0_16, %c0_17] : memref<1x128xbf16, #tpu.memory_space<vmem>>, vector<1x128xbf16>
    %47 = vector.broadcast %46 : vector<1x128xbf16> to vector<8x128xbf16>
    %48 = arith.addf %45, %47 : vector<8x128xbf16>
    %cst_18 = arith.constant 5.000000e-01 : bf16
    %49 = vector.broadcast %cst_18 : bf16 to vector<8x128xbf16>
    %50 = arith.mulf %49, %48 : vector<8x128xbf16>
    %cst_19 = arith.constant 5.000000e-01 : bf16
    %51 = vector.broadcast %cst_19 : bf16 to vector<8x128xbf16>
    %52 = arith.mulf %51, %48 : vector<8x128xbf16>
    %53 = math.tanh %52 : vector<8x128xbf16>
    %cst_20 = arith.constant 1.000000e+00 : bf16
    %54 = vector.broadcast %cst_20 : bf16 to vector<8x128xbf16>
    %55 = arith.addf %54, %53 : vector<8x128xbf16>
    %56 = arith.mulf %50, %55 : vector<8x128xbf16>
    %c0_21 = arith.constant 0 : index
    %c0_22 = arith.constant 0 : index
    %57 = vector.load %arg7[%c0_21, %c0_22] : memref<128x128xbf16, #tpu.memory_space<vmem>>, vector<128x128xbf16>
    %cst_23 = arith.constant dense<0.000000e+00> : vector<8x128xf32>
    %58 = tpu.matmul %56, %57, %cst_23 {dimension_numbers = #tpu.dot_dimension_numbers<[1], [0], [0], [1], [0, 0, 1, 1], [], []>} : vector<8x128xbf16>, vector<128x128xbf16>, vector<8x128xf32> -> vector<8x128xf32>
    %59 = arith.truncf %58 : vector<8x128xf32> to vector<8x128xbf16>
    %c0_24 = arith.constant 0 : index
    %c0_25 = arith.constant 0 : index
    %60 = vector.load %arg8[%c0_24, %c0_25] : memref<1x128xbf16, #tpu.memory_space<vmem>>, vector<1x128xbf16>
    %61 = vector.broadcast %60 : vector<1x128xbf16> to vector<8x128xbf16>
    %62 = arith.addf %59, %61 : vector<8x128xbf16>
    %cst_26 = arith.constant 5.000000e-01 : bf16
    %63 = vector.broadcast %cst_26 : bf16 to vector<8x128xbf16>
    %64 = arith.mulf %63, %62 : vector<8x128xbf16>
    %cst_27 = arith.constant 5.000000e-01 : bf16
    %65 = vector.broadcast %cst_27 : bf16 to vector<8x128xbf16>
    %66 = arith.mulf %65, %62 : vector<8x128xbf16>
    %67 = math.tanh %66 : vector<8x128xbf16>
    %cst_28 = arith.constant 1.000000e+00 : bf16
    %68 = vector.broadcast %cst_28 : bf16 to vector<8x128xbf16>
    %69 = arith.addf %68, %67 : vector<8x128xbf16>
    %70 = arith.mulf %64, %69 : vector<8x128xbf16>
    %c0_29 = arith.constant 0 : index
    %c0_30 = arith.constant 0 : index
    %71 = vector.load %arg9[%c0_29, %c0_30] : memref<128x128xbf16, #tpu.memory_space<vmem>>, vector<128x128xbf16>
    %cst_31 = arith.constant dense<0.000000e+00> : vector<8x128xf32>
    %72 = tpu.matmul %70, %71, %cst_31 {dimension_numbers = #tpu.dot_dimension_numbers<[1], [0], [0], [1], [0, 0, 1, 1], [], []>} : vector<8x128xbf16>, vector<128x128xbf16>, vector<8x128xf32> -> vector<8x128xf32>
    %73 = arith.truncf %72 : vector<8x128xf32> to vector<8x128xbf16>
    %c0_32 = arith.constant 0 : index
    %c0_33 = arith.constant 0 : index
    %74 = vector.load %arg10[%c0_32, %c0_33] : memref<1x128xbf16, #tpu.memory_space<vmem>>, vector<1x128xbf16>
    %75 = vector.broadcast %74 : vector<1x128xbf16> to vector<8x128xbf16>
    %76 = arith.addf %73, %75 : vector<8x128xbf16>
    %cst_34 = arith.constant 5.000000e-01 : bf16
    %77 = vector.broadcast %cst_34 : bf16 to vector<8x128xbf16>
    %78 = arith.mulf %77, %76 : vector<8x128xbf16>
    %cst_35 = arith.constant 5.000000e-01 : bf16
    %79 = vector.broadcast %cst_35 : bf16 to vector<8x128xbf16>
    %80 = arith.mulf %79, %76 : vector<8x128xbf16>
    %81 = math.tanh %80 : vector<8x128xbf16>
    %cst_36 = arith.constant 1.000000e+00 : bf16
    %82 = vector.broadcast %cst_36 : bf16 to vector<8x128xbf16>
    %83 = arith.addf %82, %81 : vector<8x128xbf16>
    %84 = arith.mulf %78, %83 : vector<8x128xbf16>
    %85 = arith.extf %84 : vector<8x128xbf16> to vector<8x128xf32>
    %c0_37 = arith.constant 0 : index
    %c0_38 = arith.constant 0 : index
    %86 = vector.load %arg11[%c0_37, %c0_38] : memref<2x128xf32, #tpu.memory_space<vmem>>, vector<1x128xf32>
    %87 = vector.broadcast %86 : vector<1x128xf32> to vector<8x128xf32>
    %88 = arith.mulf %85, %87 : vector<8x128xf32>
    %cst_39 = arith.constant dense<0.000000e+00> : vector<8xf32>
    %89 = vector.multi_reduction <add>, %88, %cst_39 [1] : vector<8x128xf32> to vector<8xf32>
    %90 = vector.shape_cast %89 : vector<8xf32> to vector<8x1xf32>
    %c1_40 = arith.constant 1 : index
    %c0_41 = arith.constant 0 : index
    %91 = vector.load %arg11[%c1_40, %c0_41] : memref<2x128xf32, #tpu.memory_space<vmem>>, vector<1x128xf32>
    %92 = vector.broadcast %91 : vector<1x128xf32> to vector<8x128xf32>
    %93 = arith.mulf %85, %92 : vector<8x128xf32>
    %cst_42 = arith.constant dense<0.000000e+00> : vector<8xf32>
    %94 = vector.multi_reduction <add>, %93, %cst_42 [1] : vector<8x128xf32> to vector<8xf32>
    %95 = vector.shape_cast %94 : vector<8xf32> to vector<8x1xf32>
    %96 = tpu.concatenate %90, %95 in 1 : vector<8x1xf32>, vector<8x1xf32> -> vector<8x2xf32>
    %c0_43 = arith.constant 0 : index
    %c0_44 = arith.constant 0 : index
    %97 = vector.load %arg12[%c0_43, %c0_44] : memref<1x2xf32, #tpu.memory_space<vmem>>, vector<1x2xf32>
    %98 = vector.broadcast %97 : vector<1x2xf32> to vector<8x2xf32>
    %99 = arith.addf %96, %98 : vector<8x2xf32>
    %c0_45 = arith.constant 0 : index
    %c0_46 = arith.constant 0 : index
    %100 = vector.load %arg13[%c0_45, %c0_46] : memref<8x2xf32, #tpu.memory_space<vmem>>, vector<8x2xf32>
    tpu.vector_store %arg13[%c0_45, %c0_46], %99 {strides = array<i32>} : memref<8x2xf32, #tpu.memory_space<vmem>>, vector<8x2xf32>,
    return
  }
  func.func @transform_0(%arg0: i32) -> (i32, i32) {
    %c0_i32 = arith.constant 0 : i32
    %c0_i32_0 = arith.constant 0 : i32
    return %arg0, %c0_i32 : i32, i32
  }
  func.func @transform_1(%arg0: i32) -> (i32, i32) {
    %c0_i32 = arith.constant 0 : i32
    %c0_i32_0 = arith.constant 0 : i32
    return %arg0, %c0_i32 : i32, i32
  }
  func.func @transform_2(%arg0: i32) -> (i32, i32) {
    %c0_i32 = arith.constant 0 : i32
    %c0_i32_0 = arith.constant 0 : i32
    %c0_i32_1 = arith.constant 0 : i32
    return %c0_i32, %c0_i32_0 : i32, i32
  }
  func.func @transform_3(%arg0: i32) -> (i32, i32) {
    %c0_i32 = arith.constant 0 : i32
    %c0_i32_0 = arith.constant 0 : i32
    %c0_i32_1 = arith.constant 0 : i32
    return %c0_i32, %c0_i32_0 : i32, i32
  }
  func.func @transform_4(%arg0: i32) -> (i32, i32) {
    %c0_i32 = arith.constant 0 : i32
    %c0_i32_0 = arith.constant 0 : i32
    %c0_i32_1 = arith.constant 0 : i32
    return %c0_i32, %c0_i32_0 : i32, i32
  }
  func.func @transform_5(%arg0: i32) -> (i32, i32) {
    %c0_i32 = arith.constant 0 : i32
    %c0_i32_0 = arith.constant 0 : i32
    %c0_i32_1 = arith.constant 0 : i32
    return %c0_i32, %c0_i32_0 : i32, i32
  }
  func.func @transform_6(%arg0: i32) -> (i32, i32) {
    %c0_i32 = arith.constant 0 : i32
    %c0_i32_0 = arith.constant 0 : i32
    %c0_i32_1 = arith.constant 0 : i32
    return %c0_i32, %c0_i32_0 : i32, i32
  }
  func.func @transform_7(%arg0: i32) -> (i32, i32) {
    %c0_i32 = arith.constant 0 : i32
    %c0_i32_0 = arith.constant 0 : i32
    %c0_i32_1 = arith.constant 0 : i32
    return %c0_i32, %c0_i32_0 : i32, i32
  }
  func.func @transform_8(%arg0: i32) -> (i32, i32) {
    %c0_i32 = arith.constant 0 : i32
    %c0_i32_0 = arith.constant 0 : i32
    %c0_i32_1 = arith.constant 0 : i32
    return %c0_i32, %c0_i32_0 : i32, i32
  }
  func.func @transform_9(%arg0: i32) -> (i32, i32) {
    %c0_i32 = arith.constant 0 : i32
    %c0_i32_0 = arith.constant 0 : i32
    %c0_i32_1 = arith.constant 0 : i32
    return %c0_i32, %c0_i32_0 : i32, i32
  }
  func.func @transform_10(%arg0: i32) -> (i32, i32) {
    %c0_i32 = arith.constant 0 : i32
    %c0_i32_0 = arith.constant 0 : i32
    %c0_i32_1 = arith.constant 0 : i32
    return %c0_i32, %c0_i32_0 : i32, i32
  }
  func.func @transform_11(%arg0: i32) -> (i32, i32) {
    %c0_i32 = arith.constant 0 : i32
    %c0_i32_0 = arith.constant 0 : i32
    %c0_i32_1 = arith.constant 0 : i32
    return %c0_i32, %c0_i32_0 : i32, i32
  }
  func.func @transform_12(%arg0: i32) -> (i32, i32) {
    %c0_i32 = arith.constant 0 : i32
    %c0_i32_0 = arith.constant 0 : i32
    return %arg0, %c0_i32 : i32, i32
  }
}

</mosaic_0001>

<bundles_post_ra>
// kernel: tpu_custom_call.1
= control target key start
LH: loop header
LB: loop body
LE: loop exit
PB: predicated region body
PF: predicated region fallthrough
CT: control target
= control target key end

     0   :  { %17 = vsyncpa [#allocation3], 0  ;;  %s949_s0 = inlined_call_operand.vmem [shape: f32[8,4], index: 0, kind: input, shape index: {}]   ;;  %s950_s1 = inlined_call_operand.vmem [shape: f32[8,1], index: 1, kind: input, shape index: {}]   ;;  %s951_s2 = inlined_call_operand.vmem [shape: bf16[5,128], index: 2, kind: input, shape index: {}]   ;;  %s952_s3 = inlined_call_operand.vmem [shape: bf16[1,128], index: 3, kind: input, shape index: {}]   ;;  %s953_s4 = inlined_call_operand.hbm [shape: bf16[128,128], index: 4, kind: input, shape index: {}]   ;;  %s954_s5 = inlined_call_operand.vmem [shape: bf16[1,128], index: 5, kind: input, shape index: {}]   ;;  %s955_s6 = inlined_call_operand.hbm [shape: bf16[128,128], index: 6, kind: input, shape index: {}]   ;;  %s956_s7 = inlined_call_operand.vmem [shape: bf16[1,128], index: 7, kind: input, shape index: {}]   ;;  %s957_s8 = inlined_call_operand.hbm [shape: bf16[128,128], index: 8, kind: input, shape index: {}]   ;;  %s958_s9 = inlined_call_operand.vmem [shape: bf16[1,128], index: 9, kind: input, shape index: {}]   ;;  %s959_s10 = inlined_call_operand.vmem [shape: f32[2,128], index: 10, kind: input, shape index: {}]   ;;  %s960_s11 = inlined_call_operand.vmem [shape: f32[1,2], index: 11, kind: input, shape index: {}]   ;;  %s961_s12 = inlined_call_operand.vmem [shape: f32[8,2], index: 12, kind: output, shape index: {}]  }
   0x1   :  { %18 = vsyncpa [#allocation5], 0  ;;  %s787_s21 = smov [#allocation4]   ;;  %s788_s23 = smov [#allocation2]  }
   0x2   :  { %s46_s22 = sshll.u32 %s787_s21, 4  ;;  %s32_s24 = sshll.u32 %s788_s23, 4  ;;  %s47_s22 = int_to_ptr.vmem [resolvable:$true] %s46_s22  ;;  %s33_s24 = int_to_ptr.vmem [resolvable:$true] %s32_s24 }
   0x3   :  { %s731_s25 = scalar_lea.vmem %s47_s22, 1024  ;;  %p736_p1 = scmp.lt.s32.totalorder %s47_s22, %s47_s22 }
   0x4   :  { %p732_p0 = scmp.ne.s32.totalorder %s47_s22, %s731_s25  ;;  %p737_p2 = scmp.lt.s32.totalorder %s731_s25, %s731_s25 }
   0x6   :  { %p738_p3 = por %p737_p2, %p736_p1 }
   0x8   :  { %p739_p4 = pnand %p738_p3, %p732_p0 }
   0xa   :  { %742 = shalt.err (!%p739_p4)
}
   0xb   :  { %s789_s26 = smov 64   ;;  %s790_s27 = smov 4  }
   0xc   :  { %52 = dma.hbm_to_vmem [thread:$0]  %s955_s6, 1024, %s47_s22, [#allocation5], %s789_s26, %s789_s26, %s790_s27  }
   0xd   :  { %s751_s30 = scalar_lea.vmem %s33_s24, 1024  ;;  %p756_p6 = scmp.lt.s32.totalorder %s33_s24, %s33_s24 }
   0xe   :  { %p752_p5 = scmp.ne.s32.totalorder %s33_s24, %s751_s30  ;;  %p757_p7 = scmp.lt.s32.totalorder %s751_s30, %s751_s30 }
  0x10   :  { %p758_p8 = por %p757_p7, %p756_p6 }
  0x12   :  { %p759_p9 = pnand %p758_p8, %p752_p5 }
  0x14   :  { %762 = shalt.err (!%p759_p9)
}
  0x15   :  { %38 = dma.hbm_to_vmem [thread:$0]  %s953_s4, 1024, %s33_s24, [#allocation3], %s789_s26, %s789_s26, %s790_s27  }
  0x16   :  { %s791_s15 = smov [#allocation6]  }
  0x17   :  { %s60_s16 = sshll.u32 %s791_s15, 4  ;;  %s61_s16 = int_to_ptr.vmem [resolvable:$true] %s60_s16 }
  0x18   :  { %s771_s17 = scalar_lea.vmem %s61_s16, 1024  ;;  %p776_p11 = scmp.lt.s32.totalorder %s61_s16, %s61_s16 }
  0x19   :  { %p772_p10 = scmp.ne.s32.totalorder %s61_s16, %s771_s17  ;;  %p777_p12 = scmp.lt.s32.totalorder %s771_s17, %s771_s17 }
  0x1b   :  { %p778_p13 = por %p777_p12, %p776_p11 }
  0x1d   :  { %p779_p0 = pnand %p778_p13, %p772_p10 }
  0x1f   :  { %782 = shalt.err (!%p779_p0)
}
  0x20   :  { %66 = dma.hbm_to_vmem [thread:$0]  %s957_s8, 1024, %s61_s16, [#allocation5], %s789_s26, %s789_s26, %s790_s27  }
  0x21   :  { %783 = dma.done.wait [#allocation3], 1024  }
  0x22   :  { %784 = vsyncadd [#allocation3], 4294966272 }
  0x23   :  { %785 = dma.done.wait [#allocation5], 2048  }
  0x24   :  { %786 = vsyncadd [#allocation5], 4294965248  ;;  %v792_v0 = vmov 0   ;;  %v793_v1 = vmov 2   ;;  %v85_v2 = vld [vmem:[%s949_s0] sm:$0xff]  ;;  %v794_v4 = vmov 0.0   ;;  %v99_v19 = vlaneseq }
  0x25   :  { %685 = vset.pattern.permute.xlu0 %v792_v0  ;;  %687 = vset.pattern.permute.xlu1 %v793_v1  ;;  %v86_v3 = vpack.c.bf16 %v85_v2, %v85_v2  ;;  %v691_v5 = vld [vmem:[#allocation2 + $0x38] sm:$0xff]   ;;  %v87_v6 = vld [vmem:[%s950_s1] sm:$0xff]  ;;  %v692_v7 = vld [vmem:[#allocation2 + $0x30] sm:$0xff]   ;;  %v795_v8 = vmov 1   ;;  %v796_v9 = vmov 3   ;;  %vm797_vm0 = vmmov 0  }
  0x26   :  { %614 = vmatprep.subr.bf16.mxu0 %v794_v4  ;;  %634 = vmatprep.subr.bf16.mxu1 %v794_v4  ;;  %v88_v10 = vpack.c.bf16 %v87_v6, %v87_v6  ;;  %v693_v11 = vld [vmem:[#allocation2 + $0x28] sm:$0xff]   ;;  %v694_v12 = vld [vmem:[#allocation2 + $0x20] sm:$0xff]   ;;  %v695_v13 = vld [vmem:[#allocation2 + $0x18] sm:$0xff]   ;;  %v100_v20 = vshrl.u32 %v99_v19, 7  ;;  %vm542_vm1 = vcmask 7168   ;;  %vm552_vm2 = vcmask 15360  }
  0x27   :  { %93 = vperm.xlu0 %685, %v86_v3   ;;  %127 = vperm.xlu1 %687, %v86_v3   ;;  %v696_v14 = vld [vmem:[#allocation2 + $0x10] sm:$0xff]   ;;  %v697_v15 = vld [vmem:[#allocation2 + $0x8] sm:$0xff]   ;;  %v698_v16 = vld [vmem:[#allocation2] sm:$0xff]  }
  0x28   :  { %615 = vmatpush3.bf16.msra.mxu0 %v691_v5  ;;  %630 = vmatprep.mubr.msk.bf16.mxu0 %vm797_vm0, %v794_v4  ;;  %v699_v17 = vld [vmem:[#allocation4 + $0x38] sm:$0xff]   ;;  %v700_v18 = vld [vmem:[#allocation4 + $0x30] sm:$0xff]   ;;  %v90_v21 = vld [vmem:[%s951_s2] sm:$0x1]  ;;  %v897_v23 = vsub.s32 0, %v100_v20  ;;  %v135_v33 = vsub.s32 1, %v100_v20 }
  0x29   :  { %616 = vmatprep.subr.bf16.mxu0 %v794_v4  ;;  %650 = vmatprep.mubr.msk.bf16.mxu1 %vm797_vm0, %v794_v4  ;;  %v97_v22 = vpack.i.b16 %v90_v21, %v90_v21  ;;  %v116_v24 = vshrl.u32 %v90_v21, 16  ;;  %v89_v25 = vld [vmem:[%s952_s3] sm:$0x1]  ;;  %v125_v26 = vld [vmem:[%s951_s2] sm:$0x2]  ;;  %v163_v41 = vsub.s32 2, %v100_v20 }
  0x2a   :  { %635 = vmatpush3.bf16.msra.mxu1 %v699_v17  ;;  %v105_v28 = vpack.i.b16 %v89_v25, %v89_v25  ;;  %v143_v30 = vshrl.u32 %v125_v26, 16  ;;  %v131_v32 = vpack.i.b16 %v125_v26, %v125_v26  ;;  %v152_v35 = vld [vmem:[%s951_s2] sm:$0x4]  ;;  %v701_v61 = vld [vmem:[#allocation4 + $0x28] sm:$0xff]   ;;  %v703_v63 = vld [vmem:[#allocation4 + $0x18] sm:$0xff]  }
  0x2b   :  { %686 = vset.pattern.permute.xlu0 %v795_v8  ;;  %688 = vset.pattern.permute.xlu1 %v796_v9  ;;  %v102_v27 = vrot.slane %v97_v22, %v897_v23  ;;  %v117_v29 = vpack.i.b16 %v116_v24, %v116_v24  ;;  %v159_v40 = vpack.i.b16 %v152_v35, %v152_v35  ;;  %v702_v62 = vld [vmem:[#allocation4 + $0x20] sm:$0xff]   ;;  %v705_v1 = vld [vmem:[#allocation4 + $0x8] sm:$0xff]   ;;  %v708_v5 = vld [vmem:[#allocation6 + $0x30] sm:$0xff]  }
  0x2c   :  { %113 = vperm.xlu0 %686, %v86_v3   ;;  %140 = vperm.xlu1 %688, %v86_v3   ;;  %v110_v36 = vrot.slane %v105_v28, %v897_v23  ;;  %v144_v39 = vpack.i.b16 %v143_v30, %v143_v30  ;;  %v136_v42 = vrot.slane %v131_v32, %v135_v33  ;;  %v706_v2 = vld [vmem:[#allocation4] sm:$0xff]   ;;  %v707_v3 = vld [vmem:[#allocation6 + $0x38] sm:$0xff]   ;;  %v709_v19 = vld [vmem:[#allocation6 + $0x28] sm:$0xff]  }
  0x2d   :  { %617 = vmatpush3.bf16.msra.mxu0 %v692_v7  ;;  %636 = vmatprep.subr.bf16.mxu1 %v794_v4  ;;  %v122_v38 = vrot.slane %v117_v29, %v897_v23  ;;  %v164_v48 = vrot.slane %v159_v40, %v163_v41  ;;  %v276_v6 = vld [vmem:[%s954_s5] sm:$0x1]  ;;  %v711_v21 = vld [vmem:[#allocation6 + $0x18] sm:$0xff]   ;;  %v712_v22 = vld [vmem:[#allocation6 + $0x10] sm:$0xff]  }
  0x2e   :  { %618 = vmatprep.subr.bf16.mxu0 %v794_v4  ;;  %637 = vmatpush3.bf16.msra.mxu1 %v700_v18  ;;  %v149_v47 = vrot.slane %v144_v39, %v135_v33  ;;  %v278_v7 = vpack.i.b16 %v276_v6, %v276_v6  ;;  %v710_v20 = vld [vmem:[#allocation6 + $0x20] sm:$0xff]   ;;  %v713_v24 = vld [vmem:[#allocation6 + $0x8] sm:$0xff]  }
  0x2f   :  { %638 = vmatprep.subr.bf16.mxu1 %v794_v4  ;;  %v714_v25 = vld [vmem:[#allocation6] sm:$0xff]  }
  0x30   :  { %689 = vset.pattern.permute.xlu1 %v792_v0  ;;  %690 = vset.pattern.permute.xlu0 %v792_v0  ;;  %v704_v0 = vld [vmem:[#allocation4 + $0x10] sm:$0xff]   ;;  %v283_v8 = vrot.slane %v278_v7, %v897_v23  ;;  %v394_v26 = vld [vmem:[%s956_s7] sm:$0x1] }
  0x31   :  { %155 = vperm.xlu1 %689, %v88_v10   ;;  %619 = vmatpush3.bf16.msra.mxu0 %v693_v11 }
  0x32   :  { %620 = vmatprep.subr.bf16.mxu0 %v794_v4  ;;  %639 = vmatpush3.bf16.msra.mxu1 %v701_v61 }
  0x33   :  { %640 = vmatprep.subr.bf16.mxu1 %v794_v4 }
  0x35   :  { %621 = vmatpush3.bf16.msra.mxu0 %v694_v12 }
  0x36   :  { %622 = vmatprep.subr.bf16.mxu0 %v794_v4  ;;  %641 = vmatpush3.bf16.msra.mxu1 %v702_v62 }
  0x37   :  { %642 = vmatprep.subr.bf16.mxu1 %v794_v4 }
  0x39   :  { %623 = vmatpush3.bf16.msra.mxu0 %v695_v13 }
  0x3a   :  { %624 = vmatprep.subr.bf16.mxu0 %v794_v4  ;;  %643 = vmatpush3.bf16.msra.mxu1 %v703_v63 }
  0x3b   :  { %644 = vmatprep.subr.bf16.mxu1 %v794_v4 }
  0x3d   :  { %625 = vmatpush3.bf16.msra.mxu0 %v696_v14 }
  0x3e   :  { %626 = vmatprep.subr.bf16.mxu0 %v794_v4  ;;  %645 = vmatpush3.bf16.msra.mxu1 %v704_v0 }
  0x3f   :  { %646 = vmatprep.subr.bf16.mxu1 %v794_v4 }
  0x41   :  { %627 = vmatpush3.bf16.msra.mxu0 %v697_v15 }
  0x42   :  { %628 = vmatprep.subr.bf16.mxu0 %v794_v4  ;;  %647 = vmatpush3.bf16.msra.mxu1 %v705_v1 }
  0x43   :  { %648 = vmatprep.subr.bf16.mxu1 %v794_v4 }
  0x45   :  { %629 = vmatpush3.bf16.msra.mxu0 %v698_v16 }
  0x46   :  { %654 = vmatprep.subr.bf16.mxu0 %v794_v4  ;;  %649 = vmatpush3.bf16.msra.mxu1 %v706_v2 }
  0xa2   :  { %v94_v31 = vpop.permute.xlu0 %93  ;;  %v128_v34 = vpop.permute.xlu1 %127 }
  0xa3   :  { %v103_v37 = vmul.bf16 %v102_v27, %v94_v31  ;;  %v137_v49 = vmul.bf16 %v136_v42, %v128_v34  ;;  %v396_v27 = vpack.i.b16 %v394_v26, %v394_v26 }
  0xa5   :  { %v111_v45 = vadd.bf16 %v110_v36, %v103_v37  ;;  %v401_v28 = vrot.slane %v396_v27, %v897_v23 }
  0xa7   :  { %v114_v43 = vpop.permute.xlu0 %113  ;;  %v141_v44 = vpop.permute.xlu1 %140 }
  0xa8   :  { %v123_v46 = vmul.bf16 %v122_v38, %v114_v43  ;;  %v150_v52 = vmul.bf16 %v149_v47, %v141_v44  ;;  %v512_v38 = vld [vmem:[%s958_s9] sm:$0x1] }
  0xa9   :  { %v514_v39 = vpack.i.b16 %v512_v38, %v512_v38 }
  0xaa   :  { %v124_v50 = vadd.bf16 %v123_v46, %v111_v45 }
  0xab   :  { %v519_v40 = vrot.slane %v514_v39, %v897_v23 }
  0xac   :  { %v138_v51 = vadd.bf16 %v137_v49, %v124_v50  ;;  %v156_v53 = vpop.permute.xlu1 %155 }
  0xad   :  { %v165_v54 = vmul.bf16 %v164_v48, %v156_v53 }
  0xae   :  { %v151_v55 = vadd.bf16 %v150_v52, %v138_v51  ;;  %v585_v51 = vld [vmem:[%s959_s10 + $0x1] ss:$0 sm:$0xff]  ;;  %v584_v52 = vld [vmem:[%s959_s10] ss:$0 sm:$0xff] }
  0xb0   :  { %v166_v56 = vadd.bf16 %v165_v54, %v151_v55  ;;  %v586_v55 = vld [vmem:[%s960_s11] ss:$0 sm:$0xff] }
  0xb2   :  { %v167_v57 = vmul.bf16 1056980736, %v166_v56 }
  0xb4   :  { %715 = vtanh.bf16 %v167_v57 }
  0xc2   :  { %v716_v58 = vpop.eup %715 }
  0xc3   :  { %v169_v59 = vadd.bf16 1065369472, %v716_v58 }
  0xc5   :  { %v170_v60 = vmul.bf16 %v169_v59, %v167_v57 }
  0xc7   :  { %631 = vmatmul.mubr.bf16.vlgmr.msra.gmra.mxu0 %v170_v60 }
  0xc8   :  { %670 = vmatprep.mubr.msk.bf16.mxu0 %vm797_vm0, %v794_v4  ;;  %655 = vmatpush3.bf16.msra.mxu0 %v707_v3 }
  0xc9   :  { %656 = vmatprep.subr.bf16.mxu0 %v794_v4 }
  0xcc   :  { %657 = vmatpush3.bf16.msra.mxu0 %v708_v5 }
  0xcd   :  { %658 = vmatprep.subr.bf16.mxu0 %v794_v4 }
  0xd0   :  { %659 = vmatpush3.bf16.msra.mxu0 %v709_v19 }
  0xd1   :  { %660 = vmatprep.subr.bf16.mxu0 %v794_v4 }
  0xd4   :  { %661 = vmatpush3.bf16.msra.mxu0 %v710_v20 }
  0xd5   :  { %662 = vmatprep.subr.bf16.mxu0 %v794_v4 }
  0xd8   :  { %663 = vmatpush3.bf16.msra.mxu0 %v711_v21 }
  0xd9   :  { %664 = vmatprep.subr.bf16.mxu0 %v794_v4 }
  0xdc   :  { %665 = vmatpush3.bf16.msra.mxu0 %v712_v22 }
  0xdd   :  { %666 = vmatprep.subr.bf16.mxu0 %v794_v4 }
  0xe0   :  { %667 = vmatpush3.bf16.msra.mxu0 %v713_v24 }
  0xe1   :  { %668 = vmatprep.subr.bf16.mxu0 %v794_v4 }
  0xe4   :  { %669 = vmatpush3.bf16.msra.mxu0 %v714_v25 }
 0x187   :  { %v269_v9 = vpop.f32.mrf.mxu0 }
 0x188   :  { %v275_v10 = vpack.c.bf16 %v269_v9, %v269_v9 }
 0x189   :  { %v632_v11 = vpop.f32.mrf.mxu0 }
 0x18a   :  { %v284_v12 = vadd.bf16 %v283_v8, %v275_v10 }
 0x18b   :  { %v272_v13 = vpop.f32.mrf.mxu0 }
 0x18c   :  { %v285_v14 = vmul.bf16 1056980736, %v284_v12 }
 0x18d   :  { %v633_v15 = vpop.f32.mrf.mxu0 }
 0x18e   :  { %717 = vtanh.bf16 %v285_v14 }
 0x19c   :  { %v718_v16 = vpop.eup %717 }
 0x19d   :  { %v287_v17 = vadd.bf16 1065369472, %v718_v16 }
 0x19f   :  { %v288_v18 = vmul.bf16 %v287_v17, %v285_v14 }
 0x1a1   :  { %651 = vmatmul.mubr.bf16.vlgmr.msra.gmra.mxu1 %v288_v18 }
 0x261   :  { %v387_v29 = vpop.f32.mrf.mxu1 }
 0x262   :  { %v393_v30 = vpack.c.bf16 %v387_v29, %v387_v29 }
 0x263   :  { %v652_v31 = vpop.f32.mrf.mxu1 }
 0x264   :  { %v402_v32 = vadd.bf16 %v401_v28, %v393_v30 }
 0x265   :  { %v390_v33 = vpop.f32.mrf.mxu1 }
 0x266   :  { %v403_v34 = vmul.bf16 1056980736, %v402_v32 }
 0x267   :  { %v653_v35 = vpop.f32.mrf.mxu1 }
 0x268   :  { %719 = vtanh.bf16 %v403_v34 }
 0x276   :  { %v720_v36 = vpop.eup %719 }
 0x277   :  { %v405_v37 = vadd.bf16 1065369472, %v720_v36 }
 0x279   :  { %v406_v4 = vmul.bf16 %v405_v37, %v403_v34 }
 0x27b   :  { %671 = vmatmul.mubr.bf16.vlgmr.msra.gmra.mxu0 %v406_v4 }
 0x33b   :  { %v505_v41 = vpop.f32.mrf.mxu0 }
 0x33c   :  { %v511_v42 = vpack.c.bf16 %v505_v41, %v505_v41 }
 0x33d   :  { %v672_v43 = vpop.f32.mrf.mxu0 }
 0x33e   :  { %v520_v44 = vadd.bf16 %v519_v40, %v511_v42 }
 0x33f   :  { %v508_v45 = vpop.f32.mrf.mxu0 }
 0x340   :  { %v521_v46 = vmul.bf16 1056980736, %v520_v44 }
 0x341   :  { %v673_v47 = vpop.f32.mrf.mxu0 }
 0x342   :  { %721 = vtanh.bf16 %v521_v46 }
 0x350   :  { %v722_v48 = vpop.eup %721 }
 0x351   :  { %v523_v49 = vadd.bf16 1065369472, %v722_v48 }
 0x353   :  { %v524_v50 = vmul.bf16 %v523_v49, %v521_v46 }
 0x355   :  { %v525_v23 = vunpack.c.l.bf16 %v524_v50 }
 0x357   :  { %v539_v53 = vmul.f32 %v585_v51, %v525_v23  ;;  %v531_v54 = vmul.f32 %v584_v52, %v525_v23 }
 0x359   :  { %540 = vadd.xlane.f32.xlu1 %v539_v53  ;;  %532 = vadd.xlane.f32.xlu0 %v531_v54 }
 0x3e2   :  { %v541_v56 = vpop.xlane.xlu1 %540  ;;  %v533_v57 = vpop.xlane.xlu0 %532 }
 0x3e3   :  { %v543_v58 = vsel %vm542_vm1, %v533_v57, %v541_v56 }
 0x3e4   :  { %v551_v59 = vadd.f32 %v586_v55, %v543_v58 }
 0x3e6   :  { %553 = vst.msk [vmem:[%s961_s12] sm:$0xff] %vm552_vm2, %v551_v59 }
 0x3e7   :  { %558 = vsyncpa [#allocation3], 1 }
 0x3e8   :  { %559 = vsyncpa [#allocation5], 1 }

</bundles_post_ra>
